<compile_context>
chip_gen: v7x
topology: tpu7x:2x2x1
jax: 0.10.0
libtpu: 0.0.40
codegen_flags: <defaults>
</compile_context>

<pallas_src>
import jax
import jax.numpy as jnp
from jax import lax
from jax.experimental import pallas as pl
from jax.experimental.pallas import tpu as pltpu

_HALO_ROWS = 8  # sublane-aligned halo block height for the spatially tiled path


# ---------------------------------------------------------------------------
# Hardware-aware sizing helpers
# ---------------------------------------------------------------------------
def _vmem_capacity_bytes():
    try:
        cap = getattr(pltpu.get_tpu_info(), "vmem_capacity_bytes", None)
        if cap:
            return int(cap)
    except Exception:
        pass
    return 64 * 1024 * 1024  # conservative default (v7x per-core VMEM)


def _sublane_granule(itemsize):
    # native sublane packing: 8 rows for 4-byte, 16 for 2-byte, 32 for 1-byte
    return {1: 32, 2: 16, 4: 8}.get(itemsize, 8)


def _pick_c_tile_flat(c, hw, itemsize, budget, granule):
    """Channel tile for the flattened layout (channels sit on the sublane axis).

    Must be a granule-multiple divisor of c (or the full c). Returns None if no
    candidate fits the VMEM block budget (caller falls back to the 2-D layout).
    """
    cands = {c}
    cands.update(t for t in range(granule, c, granule) if c % t == 0)
    fitting = [t for t in sorted(cands) if t * hw * itemsize <= budget]
    return max(fitting) if fitting else None


def _pick_h_tile(h, w, itemsize, budget, want_split):
    if h % 8 != 0 or h <= 8:
        return h  # cannot tile the sublane axis below 8-row granularity
    cands = [t for t in range(8, h + 1, 8) if h % t == 0]
    fitting = [t for t in cands if t * w * itemsize <= budget] or [8]
    th = max(fitting)
    if want_split and th == h and len(fitting) > 1:
        # b == 1: force >= 2 spatial tiles so megacore / pipelining has work
        th = max(t for t in fitting if t < h)
    return th


def _pick_c_tile_2d(c, th, w, itemsize, budget):
    # channel dim is NOT a sublane dim in the 2-D layout: any divisor works
    cands = [t for t in range(1, c + 1) if c % t == 0]
    fitting = [t for t in cands if t * th * w * itemsize <= budget] or [1]
    return max(fitting)


# ---------------------------------------------------------------------------
# 2-D (h, w) layout kernels (w >= 128)
# ---------------------------------------------------------------------------
def _tv2d_tile(x, top):
    """|vdiff| + |hdiff| for a (tc, th, w) tile; `top` is the row above the tile."""
    row = lax.broadcasted_iota(jnp.int32, x.shape, 1)
    col = lax.broadcasted_iota(jnp.int32, x.shape, 2)
    x_up = jnp.where(row == 0, top, pltpu.roll(x, shift=1, axis=1))     # sublane roll
    x_left = jnp.where(col == 0, 0.0, pltpu.roll(x, shift=1, axis=2))   # lane roll
    return jnp.abs(x_up - x) + jnp.abs(x_left - x)


def _make_2d_kernel(do_reduce, has_halo, cdt):
    def kernel(*refs):
        if do_reduce:
            if has_halo:
                x_ref, halo_ref, o_ref, acc_ref = refs
            else:
                x_ref, o_ref, acc_ref = refs
                halo_ref = None
        else:
            if has_halo:
                x_ref, halo_ref, o_ref = refs
            else:
                x_ref, o_ref = refs
                halo_ref = None

        x = x_ref[0].astype(cdt)                              # (tc, th, w)
        if has_halo:
            # last row of the previous h-tile; zero-padding when this is tile 0
            last = halo_ref[0].astype(cdt)[:, _HALO_ROWS - 1:_HALO_ROWS, :]
            top = jnp.where(pl.program_id(1) == 0, 0.0, last)  # (tc, 1, w)
        else:
            top = 0.0
        tv = _tv2d_tile(x, top)

        if do_reduce:
            ci = pl.program_id(2)

            @pl.when(ci == 0)
            def _():
                acc_ref[...] = jnp.zeros_like(acc_ref)

            # channel sum over the leading (non-sublane) dim: plain VALU adds
            acc_ref[...] += jnp.sum(tv.astype(jnp.float32), axis=0)

            @pl.when(ci == pl.num_programs(2) - 1)
            def _():
                o_ref[0] = acc_ref[...].astype(o_ref.dtype)
        else:
            o_ref[0] = tv.astype(o_ref.dtype)

    return kernel


# ---------------------------------------------------------------------------
# Flattened (h*w) layout kernels (w < 128) — lane-dense stores
# ---------------------------------------------------------------------------
def _make_flat_kernel(do_reduce, w, cdt):
    def kernel(mask_ref, x_ref, *rest):
        if do_reduce:
            o_ref, acc_ref = rest
        else:
            (o_ref,) = rest

        x = x_ref[0].astype(cdt)                    # (tc, hw), row-major (h, w)
        keep = mask_ref[...].astype(cdt)            # (2, hw): [vertical, horizontal]
        x_up = pltpu.roll(x, shift=w, axis=1) * keep[0:1, :]
        x_left = pltpu.roll(x, shift=1, axis=1) * keep[1:2, :]
        tv = jnp.abs(x_up - x) + jnp.abs(x_left - x)

        if do_reduce:
            ci = pl.program_id(1)

            @pl.when(ci == 0)
            def _():
                acc_ref[...] = jnp.zeros_like(acc_ref)

            # accumulate the full (tc, hw) partial; defer the cross-sublane
            # reduce to the finalize step (one XLU reduce instead of nc)
            acc_ref[...] += tv.astype(jnp.float32)

            @pl.when(ci == pl.num_programs(1) - 1)
            def _():
                o_ref[0] = jnp.sum(acc_ref[...], axis=0,
                                   keepdims=True).astype(o_ref.dtype)
        else:
            o_ref[0] = tv.astype(o_ref.dtype)

    return kernel


# ---------------------------------------------------------------------------
# Wrapper
# ---------------------------------------------------------------------------
def tv_loss(x, reduce=True, size_average=True, *, channel_tile=None, h_tile=None):
    """Pallas TV forward. `size_average` kept for API parity (unused in reference)."""
    del size_average
    b, c, h, w = x.shape
    itemsize = jnp.dtype(x.dtype).itemsize
    granule = _sublane_granule(itemsize)
    vmem_cap = _vmem_capacity_bytes()
    block_budget = max(1 << 20, vmem_cap // 16)        # ~8 MiB on 128 MiB VMEM, ~4 MiB on v7x
    cparams_kw = dict(vmem_limit_bytes=int(vmem_cap * 3) // 4)
    if reduce:
        compute_dtype = jnp.float32
    else:
        compute_dtype = x.dtype if x.dtype in (jnp.float32, jnp.bfloat16) else jnp.float32

    # ---- path selection: lane-dense flattened layout for small w, 2-D otherwise
    use_flat = w < 128
    tc_flat = None
    if use_flat:
        if channel_tile is not None:
            assert c % channel_tile == 0 and (channel_tile == c or channel_tile % granule == 0)
            tc_flat = channel_tile
        else:
            tc_flat = _pick_c_tile_flat(c, h * w, itemsize, block_budget, granule)
        if tc_flat is None:
            use_flat = False  # 2-D layout can tile channels arbitrarily → always fits

    if use_flat:
        hw = h * w
        tc = tc_flat
        nc = c // tc
        xf = x.reshape(b, c, hw)                                 # free, row-major
        # boundary keep-masks, computed once in the wrapper (no in-kernel iota/mod)
        p = jnp.arange(hw, dtype=jnp.int32)
        keep = jnp.stack([(p >= w).astype(jnp.float32),          # not image row 0
                          (p % w != 0).astype(jnp.float32)])     # not image col 0
        mask_spec = pl.BlockSpec((2, hw), lambda i, j: (0, 0))
        x_spec = pl.BlockSpec((1, tc, hw), lambda i, j: (i, j, 0))

        if reduce:
            out = pl.pallas_call(
                _make_flat_kernel(True, w, jnp.float32),
                out_shape=jax.ShapeDtypeStruct((b, 1, hw), x.dtype),
                grid=(b, nc),
                in_specs=[mask_spec, x_spec],
                out_specs=pl.BlockSpec((1, 1, hw), lambda i, j: (i, 0, 0)),
                scratch_shapes=[pltpu.VMEM((tc, hw), jnp.float32)],
                compiler_params=pltpu.CompilerParams(
                    dimension_semantics=("parallel", "arbitrary"), **cparams_kw),
            )(keep, xf)
            return out.reshape(b, h, w)

        out = pl.pallas_call(
            _make_flat_kernel(False, w, compute_dtype),
            out_shape=jax.ShapeDtypeStruct((b, c, hw), x.dtype),
            grid=(b, nc),
            in_specs=[mask_spec, x_spec],
            out_specs=pl.BlockSpec((1, tc, hw), lambda i, j: (i, j, 0)),
            compiler_params=pltpu.CompilerParams(
                dimension_semantics=("parallel", "parallel"), **cparams_kw),
        )(keep, xf)
        return out.reshape(b, c, hw).reshape(b, c, h, w)

    # ---- 2-D (h, w) layout: sublane/lane rolls, spatial h-tiling with 8-row halo
    if h_tile is not None:
        assert h % h_tile == 0 and (h_tile == h or h_tile % 8 == 0)
        th = h_tile
    else:
        th = _pick_h_tile(h, w, itemsize, block_budget, want_split=(b == 1))
    nh = h // th
    if channel_tile is not None:
        assert c % channel_tile == 0
        tc = channel_tile
    else:
        tc = _pick_c_tile_2d(c, th, w, itemsize, block_budget)
    nc = c // tc
    has_halo = nh > 1
    nhb = th // _HALO_ROWS if has_halo else 1

    in_specs = [pl.BlockSpec((1, tc, th, w), lambda bi, hi, ci: (bi, ci, hi, 0))]
    args = [x]
    if has_halo:
        # sublane-aligned 8-row block whose last row is row (hi*th - 1); clamped
        # (and masked in-kernel) for the first h-tile
        in_specs.append(pl.BlockSpec(
            (1, tc, _HALO_ROWS, w),
            lambda bi, hi, ci: (bi, ci, jnp.maximum(hi * nhb - 1, 0), 0)))
        args.append(x)

    if reduce:
        return pl.pallas_call(
            _make_2d_kernel(True, has_halo, jnp.float32),
            out_shape=jax.ShapeDtypeStruct((b, h, w), x.dtype),
            grid=(b, nh, nc),
            in_specs=in_specs,
            out_specs=pl.BlockSpec((1, th, w), lambda bi, hi, ci: (bi, hi, 0)),
            scratch_shapes=[pltpu.VMEM((th, w), jnp.float32)],
            compiler_params=pltpu.CompilerParams(
                dimension_semantics=("parallel", "parallel", "arbitrary"), **cparams_kw),
        )(*args)

    return pl.pallas_call(
        _make_2d_kernel(False, has_halo, compute_dtype),
        out_shape=jax.ShapeDtypeStruct((b, c, h, w), x.dtype),
        grid=(b, nh, nc),
        in_specs=in_specs,
        out_specs=pl.BlockSpec((1, tc, th, w), lambda bi, hi, ci: (bi, ci, hi, 0)),
        compiler_params=pltpu.CompilerParams(
            dimension_semantics=("parallel", "parallel", "parallel"), **cparams_kw),
    )(*args)


# ---------------------------------------------------------------------------
# Pure-JAX reference mirroring F.conv2d with the diagonal [1,-1,0] kernels
# ---------------------------------------------------------------------------
def _tv_reference(x, reduce=True):
    b, c, h, w = x.shape
    x_up = jnp.pad(x, ((0, 0), (0, 0), (1, 0), (0, 0)))[:, :, :h, :]
    x_left = jnp.pad(x, ((0, 0), (0, 0), (0, 0), (1, 0)))[:, :, :, :w]
    tv = jnp.abs(x_up - x) + jnp.abs(x_left - x)
    if reduce:
        tv = jnp.sum(tv, axis=1)
    return tv


if __name__ == "__main__":
    # small-w flattened path (lane-dense hw layout)
    b, c, h, w = 2, 4, 16, 16
    x = jax.random.normal(jax.random.PRNGKey(0), (b, c, h, w), dtype=jnp.float32)
    out = jax.block_until_ready(tv_loss(x, reduce=True))
    assert out.shape == (b, h, w), out.shape
    assert jnp.allclose(out, _tv_reference(x, True), atol=1e-5, rtol=1e-5), "reduce mismatch"
    out_nr = jax.block_until_ready(tv_loss(x, reduce=False))
    assert out_nr.shape == (b, c, h, w)
    assert jnp.allclose(out_nr, _tv_reference(x, False), atol=1e-5, rtol=1e-5), "noreduce mismatch"

    # flattened path, multi-channel-tile accumulator (c=16 split into 2 tiles of 8)
    x2 = jax.random.normal(jax.random.PRNGKey(1), (2, 16, 16, 16), dtype=jnp.float32)
    assert jnp.allclose(jax.block_until_ready(tv_loss(x2, reduce=True, channel_tile=8)),
                        _tv_reference(x2, True), atol=1e-5, rtol=1e-5), "flat tiled reduce"
    assert jnp.allclose(jax.block_until_ready(tv_loss(x2, reduce=False, channel_tile=8)),
                        _tv_reference(x2, False), atol=1e-5, rtol=1e-5), "flat tiled noreduce"

    # wide-image 2-D path (w >= 128): spatial h-tiling with halo, b==1 forced split
    x3 = jax.random.normal(jax.random.PRNGKey(2), (1, 3, 32, 128), dtype=jnp.float32)
    assert jnp.allclose(jax.block_until_ready(tv_loss(x3, reduce=True)),
                        _tv_reference(x3, True), atol=1e-5, rtol=1e-5), "2d reduce"
    assert jnp.allclose(jax.block_until_ready(tv_loss(x3, reduce=False)),
                        _tv_reference(x3, False), atol=1e-5, rtol=1e-5), "2d noreduce"
    assert jnp.allclose(jax.block_until_ready(tv_loss(x3, reduce=True, channel_tile=1, h_tile=8)),
                        _tv_reference(x3, True), atol=1e-5, rtol=1e-5), "2d tiled reduce"

    print("KERNEL_OK")
</pallas_src>

<mosaic_0001>
module attributes {stable_mosaic.version = 11 : i64} {
  func.func @kernel(%arg0: i32, %arg1: i32, %arg2: memref<2x256xf32, #tpu.memory_space<vmem>>, %arg3: memref<1x4x256xf32, #tpu.memory_space<vmem>>, %arg4: memref<1x1x256xf32, #tpu.memory_space<vmem>>, %arg5: memref<4x256xf32, #tpu.memory_space<vmem>>) attributes {dimension_semantics = [#tpu.dimension_semantics<parallel>, #tpu.dimension_semantics<arbitrary>], iteration_bounds = array<i64: 2, 1>, scalar_prefetch = 0 : i64, scratch_operands = 1 : i64, tpu.core_type = #tpu.core_type<tc>, window_params = [{pipeline_mode = #tpu.pipeline_mode<synchronous>, transform_indices = @transform_0, window_bounds = array<i64: 2, 256>}, {transform_indices = @transform_1, window_bounds = array<i64: 1, 4, 256>}, {transform_indices = @transform_2, window_bounds = array<i64: 1, 1, 256>}]} {
    %c0 = arith.constant 0 : index
    %c0_0 = arith.constant 0 : index
    %c0_1 = arith.constant 0 : index
    %0 = vector.load %arg3[%c0, %c0_0, %c0_1] : memref<1x4x256xf32, #tpu.memory_space<vmem>>, vector<1x4x256xf32>
    %1 = vector.shape_cast %0 : vector<1x4x256xf32> to vector<4x256xf32>
    %c0_2 = arith.constant 0 : index
    %c0_3 = arith.constant 0 : index
    %2 = vector.load %arg2[%c0_2, %c0_3] : memref<2x256xf32, #tpu.memory_space<vmem>>, vector<2x256xf32>
    %c16_i32 = arith.constant 16 : i32
    %3 = tpu.dynamic_rotate %1 by %c16_i32 dim 1 : vector<4x256xf32>, i32 -> vector<4x256xf32>
    %4 = vector.extract_strided_slice %2 {offsets = [0, 0], sizes = [1, 256], strides = [1, 1]} : vector<2x256xf32> to vector<1x256xf32>
    %5 = vector.broadcast %4 : vector<1x256xf32> to vector<4x256xf32>
    %6 = arith.mulf %3, %5 : vector<4x256xf32>
    %c1_i32 = arith.constant 1 : i32
    %7 = tpu.dynamic_rotate %1 by %c1_i32 dim 1 : vector<4x256xf32>, i32 -> vector<4x256xf32>
    %8 = vector.extract_strided_slice %2 {offsets = [1, 0], sizes = [1, 256], strides = [1, 1]} : vector<2x256xf32> to vector<1x256xf32>
    %9 = vector.broadcast %8 : vector<1x256xf32> to vector<4x256xf32>
    %10 = arith.mulf %7, %9 : vector<4x256xf32>
    %11 = arith.subf %6, %1 : vector<4x256xf32>
    %12 = math.absf %11 : vector<4x256xf32>
    %13 = arith.subf %10, %1 : vector<4x256xf32>
    %14 = math.absf %13 : vector<4x256xf32>
    %15 = arith.addf %12, %14 : vector<4x256xf32>
    %c0_i32 = arith.constant 0 : i32
    %16 = arith.cmpi eq, %arg1, %c0_i32 : i32
    %17 = arith.extui %16 : i1 to i32
    %c0_i32_4 = arith.constant 0 : i32
    %18 = arith.cmpi ne, %17, %c0_i32_4 : i32
    scf.if %18 {
      %cst = arith.constant 0.000000e+00 : f32
      %25 = vector.broadcast %cst : f32 to vector<4x256xf32>
      %c0_11 = arith.constant 0 : index
      %c0_12 = arith.constant 0 : index
      %26 = vector.load %arg5[%c0_11, %c0_12] : memref<4x256xf32, #tpu.memory_space<vmem>>, vector<4x256xf32>
      tpu.vector_store %arg5[%c0_11, %c0_12], %25 {strides = array<i32>} : memref<4x256xf32, #tpu.memory_space<vmem>>, vector<4x256xf32>,
    } else {
    }
    %c0_5 = arith.constant 0 : index
    %c0_6 = arith.constant 0 : index
    %19 = vector.load %arg5[%c0_5, %c0_6] : memref<4x256xf32, #tpu.memory_space<vmem>>, vector<4x256xf32>
    %20 = arith.addf %19, %15 : vector<4x256xf32>
    %c0_7 = arith.constant 0 : index
    %c0_8 = arith.constant 0 : index
    %21 = vector.load %arg5[%c0_7, %c0_8] : memref<4x256xf32, #tpu.memory_space<vmem>>, vector<4x256xf32>
    tpu.vector_store %arg5[%c0_7, %c0_8], %20 {strides = array<i32>} : memref<4x256xf32, #tpu.memory_space<vmem>>, vector<4x256xf32>,
    %c0_i32_9 = arith.constant 0 : i32
    %22 = arith.cmpi eq, %arg1, %c0_i32_9 : i32
    %23 = arith.extui %22 : i1 to i32
    %c0_i32_10 = arith.constant 0 : i32
    %24 = arith.cmpi ne, %23, %c0_i32_10 : i32
    scf.if %24 {
      %c0_11 = arith.constant 0 : index
      %c0_12 = arith.constant 0 : index
      %25 = vector.load %arg5[%c0_11, %c0_12] : memref<4x256xf32, #tpu.memory_space<vmem>>, vector<4x256xf32>
      %cst = arith.constant dense<0.000000e+00> : vector<256xf32>
      %26 = vector.multi_reduction <add>, %25, %cst [0] : vector<4x256xf32> to vector<256xf32>
      %27 = vector.shape_cast %26 : vector<256xf32> to vector<1x256xf32>
      %c0_13 = arith.constant 0 : index
      %c0_14 = arith.constant 0 : index
      %c0_15 = arith.constant 0 : index
      %28 = vector.load %arg4[%c0_13, %c0_14, %c0_15] : memref<1x1x256xf32, #tpu.memory_space<vmem>>, vector<1x1x256xf32>
      %29 = vector.shape_cast %28 : vector<1x1x256xf32> to vector<1x256xf32>
      %30 = vector.shape_cast %27 : vector<1x256xf32> to vector<1x1x256xf32>
      tpu.vector_store %arg4[%c0_13, %c0_14, %c0_15], %30 {strides = array<i32>} : memref<1x1x256xf32, #tpu.memory_space<vmem>>, vector<1x1x256xf32>,
    } else {
    }
    return
  }
  func.func @transform_0(%arg0: i32, %arg1: i32) -> (i32, i32) {
    %c0_i32 = arith.constant 0 : i32
    %c0_i32_0 = arith.constant 0 : i32
    %c0_i32_1 = arith.constant 0 : i32
    return %c0_i32, %c0_i32_0 : i32, i32
  }
  func.func @transform_1(%arg0: i32, %arg1: i32) -> (i32, i32, i32) {
    %c0_i32 = arith.constant 0 : i32
    %c0_i32_0 = arith.constant 0 : i32
    return %arg0, %arg1, %c0_i32 : i32, i32, i32
  }
  func.func @transform_2(%arg0: i32, %arg1: i32) -> (i32, i32, i32) {
    %c0_i32 = arith.constant 0 : i32
    %c0_i32_0 = arith.constant 0 : i32
    %c0_i32_1 = arith.constant 0 : i32
    return %arg0, %c0_i32, %c0_i32_0 : i32, i32, i32
  }
}

</mosaic_0001>

<bundles_post_ra>
// kernel: tpu_custom_call.1
= control target key start
LH: loop header
LB: loop body
LE: loop exit
PB: predicated region body
PF: predicated region fallthrough
CT: control target
= control target key end

     0   :  { %7 = vsyncpa [#allocation4], 0  ;;  %s910_s0 = inlined_call_operand.hbm [shape: f32[2,256], index: 0, kind: input, shape index: {}]   ;;  %s911_s1 = inlined_call_operand.hbm [shape: f32[2,4,256], index: 1, kind: input, shape index: {}]   ;;  %s912_s2 = inlined_call_operand.hbm [shape: f32[2,1,256], index: 2, kind: output, shape index: {}]  }
   0x1   :  { %8 = vsyncpa [#allocation7], 0 }
   0x2   :  { %10 = vsyncpa [#allocation7 + $0x1], 0 }
   0x3   :  { %11 = vsyncpa [#allocation5], 0 }
   0x4   :  { %13 = vsyncpa [#allocation5 + $0x1], 0  ;;  %s690_s9 = smov 0   ;;  %s692_s10 = smov 0  }
   0x5   :  { %s694_s11 = smov 0   ;;  %s696_s12 = smov 0  }
   0x6   :  { %s698_s13 = smov 0   ;;  %s700_s14 = smov 0  }
   0x7 LB: > { %s426_s15 = sadd.s32 4294967295, %s667_s14   ;;  %s427_s16 = sadd.s32 4294967294, %s667_s14   ;;  %s667_s14 = sphi %s700_s14, %s19_s14   ;;  %s663_s13 = sphi %s698_s13, %s937_s13   ;;  %s659_s12 = sphi %s696_s12, %s936_s12   ;;  %s655_s11 = sphi %s694_s11, %s935_s11   ;;  %s651_s10 = sphi %s692_s10, %s934_s10   ;;  %s647_s9 = sphi %s690_s9, %s933_s9  }
   0x8   : > { %p74_p0 = scmp.ne.s32.totalorder %s651_s10, %s647_s9  ;;  %p724_p1 = scmp.eq.s32.totalorder %s426_s15, 0 }
   0x9   : > { %p728_p2 = scmp.eq.s32.totalorder %s426_s15, 1  ;;  %p104_p3 = scmp.eq.s32.totalorder %s427_s16, 1 }
   0xa   : > { %s917_s17 = scalar_select %p724_p1, 1, 0 }
   0xb   : > { %s918_s18 = scalar_select %p728_p2, 1, 0 }
   0xc   : > { %p734_p4 = por %p724_p1, %p74_p0  ;;  %p428_p5 = scmp.ge.s32.totalorder %s667_s14, 1 }
   0xd   : > { %p739_p6 = por %p104_p3, %p74_p0  ;;  %p111_p7 = scmp.lt.s32.totalorder %s667_s14, 3 }
   0xe   : > { %s919_s19 = scalar_select %p734_p4, 1, 0 }
   0xf   : > { %s920_s20 = scalar_select %p739_p6, 1, 0 }
  0x10   : > { %p744_p8 = pnand %p428_p5, %p111_p7  ;;  %s669_s22 = smov [#allocation3]  }
  0x11   : > { %s124_s23 = sshll.u32 %s669_s22, 4  ;;  %s31_s25 = sadd.s32 1, %s663_s13  ;;  %s125_s23 = int_to_ptr.vmem [resolvable:$true] %s124_s23 }
  0x12   : > { %s921_s21 = scalar_select %p744_p8, 1, 0 }
  0x13   : > { %p454_p10 = pneg %p744_p8  ;;  %s61_s26 = sadd.s32 1, %s655_s11 }
  0x14   : > { %p759_p12 = scmp.ge.s32.totalorder %s31_s25, 2  ;;  %s523_s30 = scalar_lea.hbm %s910_s0, 64 }
  0x15   : > { %p753_p11 = pnand %p454_p10, %p724_p1  ;;  %p524_p13 = scmp.ne.s32.totalorder %s910_s0, %s523_s30 }
  0x16   : > { %s923_s27 = scalar_select %p759_p12, 1, 0 }
  0x17   : > { %p525_p0 = pneg %p753_p11  ;;  %p530_p7 = scmp.lt.u32.totalorder %s523_s30, %s910_s0 }
  0x19   : > { %p526_p3 = pnand %p525_p0, %p524_p13 }
  0x1b   : > { %p527_p5 = pneg %p526_p3 }
  0x1d   : > { %p532_p10 = pnand %p530_p7, %p527_p5 }
  0x1f   : > { %535 = shalt.err (!%p532_p10)
}
  0x20   : > { %s536_s7 = scalar_lea.vmem %s125_s23, 64  ;;  %p544_p1 = scmp.lt.s32.totalorder %s125_s23, %s125_s23 }
  0x21   : > { %p537_p9 = scmp.ne.s32.totalorder %s125_s23, %s536_s7  ;;  %p545_p8 = scmp.lt.s32.totalorder %s536_s7, %s536_s7 }
  0x23   : > { %p539_p6 = pnand %p537_p9, %p525_p0  ;;  %p546_p2 = por %p545_p8, %p544_p1 }
  0x25   : > { %p540_p4 = pneg %p539_p6 }
  0x27   : > { %p547_p12 = pnand %p546_p2, %p540_p4 }
  0x29   : > { %550 = shalt.err (!%p547_p12)
}
  0x2a   : > { %457 = dma.hbm_to_vmem [thread:$0]  (!%p753_p11), %s910_s0, 64, %s125_s23, [#allocation4]  }
  0x2b   : > { %p924_p1 = scmp.ne.s32.totalorder %s923_s27, 0  ;;  %p68_p2 = scmp.ne.s32.totalorder %s655_s11, %s651_s10 }
  0x2c   : > { %p69_p4 = scmp.eq.s32.totalorder %s667_s14, 0  ;;  %p467_p6 = scmp.lt.s32.totalorder %s667_s14, 2 }
  0x2d   : > { %s939_s25 = smov (%p924_p1, %s31_s25), 0  ;;  %p925_p12 = scmp.ne.s32.totalorder %s918_s18, 0 }
  0x2e   : > { %s56_s16 = ssub.s32 %s663_s13, %s939_s25  ;;  %p70_p9 = por %p69_p4, %p68_p2 }
  0x2f   : > { %p59_p8 = scmp.eq.s32.totalorder %s56_s16, 0  ;;  %p791_p13 = por %p925_p12, %p68_p2 }
  0x30   : > { %s135_s24 = sand.u32 1, %s655_s11   ;;  %s443_s27 = sshll.u32 %s663_s13, 7 }
  0x31   : > { %s799_s28 = scalar_select %p59_p8, %s655_s11, %s61_s26  }
  0x32   : > { %s431_s23 = sshll.u32 %s135_s24, 3  ;;  %s805_s3 = scalar_lea.hbm %s911_s1, %s443_s27 }
  0x33   : > { %s139_s18 = scalar_lea.vmem [#allocation6], %s431_s23  ;;  %p809_p11 = pnand %p467_p6, %p70_p9 }
  0x34   : > { %s149_s4 = sshll.u32 %s139_s18, 4  ;;  %s136_s26 = scalar_lea.sflag [#allocation7], %s135_s24  ;;  %s807_s4 = int_to_ptr.vmem [resolvable:$true] %s149_s4 }
  0x35   : > { %s551_s6 = scalar_lea.hbm %s805_s3, 128  ;;  %p553_p3 = pneg %p809_p11 }
  0x36   : > { %p552_p0 = scmp.ne.s32.totalorder %s805_s3, %s551_s6  ;;  %s556_s15 = scalar_lea.hbm %s911_s1, 256 }
  0x37   : > { %p557_p10 = scmp.lt.u32.totalorder %s805_s3, %s911_s1  ;;  %p558_p1 = scmp.lt.u32.totalorder %s556_s15, %s551_s6 }
  0x38   : > { %p554_p5 = pnand %p553_p3, %p552_p0  ;;  %p560_p4 = scmp.lt.u32.totalorder %s551_s6, %s805_s3 }
  0x39   : > { %p559_p2 = por %p558_p1, %p557_p10 }
  0x3a   : > { %p555_p7 = pneg %p554_p5 }
  0x3b   : > { %p561_p6 = por %p560_p4, %p559_p2 }
  0x3d   : > { %p562_p8 = pnand %p561_p6, %p555_p7 }
  0x3f   : > { %565 = shalt.err (!%p562_p8)
}
  0x40   : > { %s566_s24 = scalar_lea.vmem %s807_s4, 128  ;;  %s670_s27 = smov [#allocation6]  }
  0x41   : > { %p567_p9 = scmp.ne.s32.totalorder %s807_s4, %s566_s24  ;;  %s571_s29 = sshll.u32 %s670_s27, 4  ;;  %s572_s29 = int_to_ptr.vmem [resolvable:$false] %s571_s29 }
  0x42   : > { %s573_s30 = scalar_lea.vmem %s572_s29, 256  ;;  %p574_p5 = scmp.lt.s32.totalorder %s807_s4, %s572_s29 }
  0x43   : > { %p569_p12 = pnand %p567_p9, %p553_p3  ;;  %p575_p10 = scmp.lt.s32.totalorder %s573_s30, %s566_s24 }
  0x45   : > { %p570_p0 = pneg %p569_p12  ;;  %p576_p1 = por %p575_p10, %p574_p5 }
  0x47   : > { %p577_p2 = pnand %p576_p1, %p570_p0 }
  0x49   : > { %580 = shalt.err (!%p577_p2)
}
  0x4a   : > { %461 = dma.hbm_to_vmem [thread:$0]  (!%p809_p11), %s805_s3, 128, %s807_s4, %s136_s26  }
  0x4b   : > { %p928_p7 = scmp.ne.s32.totalorder %s921_s21, 0 }
  0x4c   : > { %p929_p3 = scmp.ne.s32.totalorder (!%p928_p7), %s917_s17, 0 }
  0x4d   : > { %158 = sbr.rel (%p928_p7) target bundleno = 254 (0xfe), region = 28 }
  0x54   : > { %634 = dma.done.wait (%p929_p3), [#allocation4], 64  }
  0x55   : > { %636 = vsyncadd (%p929_p3), [#allocation4], 4294967232  ;;  %s845_s18 = sand.u32 1, %s651_s10   ;;  %p930_p4 = scmp.ne.s32.totalorder %s919_s19, 0 }
  0x56   : > { %s436_s6 = sshll.u32 %s845_s18, 3  ;;  %s165_s5 = scalar_lea.sflag [#allocation7], %s845_s18 }
  0x57   : > { %s168_s7 = scalar_lea.vmem [#allocation6], %s436_s6 }
  0x58   : > { %638 = dma.done.wait (%p930_p4), %s165_s5, 128  }
  0x59   : > { %640 = vsyncadd (%p930_p4), %s165_s5, 4294967168  ;;  %v189_v0 = vld [vmem:[%s168_s7] sm:$0xff]  ;;  %s671_s21 = smov 1   ;;  %s672_s3 = smov 16   ;;  %v198_v2 = vlaneseq  ;;  %v190_v8 = vld [vmem:[#allocation3] sm:$0xf] }
  0x5a   : > { %224 = vrot.lane.b32.xlu1 %v189_v0, %s671_s21  ;;  %194 = vrot.lane.b32.xlu0 %v189_v0, %s672_s3  ;;  %v192_v1 = vcombine.high %v189_v0, %v189_v0  ;;  %vm280_vm2 = vcmask 1043456   ;;  %v673_v48 = vmov 1966171168   ;;  %s437_s17 = sshll.u32 %s845_s18, 1  ;;  %s444_s19 = sshll.u32 %s659_s12, 5 }
  0x5b   : > { %v205_v3 = vshrl.u32 %v198_v2, 7  ;;  %v199_v9 = vand.u32 127, %v198_v2  ;;  %v299_v49 = vunpack.c.l.s4 %v673_v48  ;;  %s188_s4 = scalar_lea.vmem [#allocation8], %s437_s17  ;;  %vm315_vm3 = vcmp.lt.s32.totalorder %v198_v2, 256  ;;  %s861_s16 = scalar_lea.hbm %s912_s2, %s444_s19 }
  0x5c   : > { %s333_s26 = sshll.u32 %s188_s4, 4  ;;  %s319_s23 = scalar_lea.sflag [#allocation5], %s845_s18  ;;  %s863_s26 = int_to_ptr.vmem [resolvable:$true] %s333_s26 }
  0x5d   : > { %v233_v4 = vsub.s32 1, %v205_v3  ;;  %v237_v5 = vsub.s32 3, %v205_v3  ;;  %v206_v6 = vsub.s32 0, %v205_v3  ;;  %v210_v7 = vsub.s32 2, %v205_v3  ;;  %s581_s24 = scalar_lea.vmem %s863_s26, 32  ;;  %s674_s12 = smov [#allocation8]  }
  0x5e   : > { %226 = vrot.lane.b32.xlu1 %v192_v1, %s671_s21  ;;  %196 = vrot.lane.b32.xlu0 %v192_v1, %s672_s3  ;;  %vm228_vm0 = vcmp.lt.s32.totalorder %v199_v9, 1  ;;  %vm200_vm1 = vcmp.lt.s32.totalorder %v199_v9, 16  ;;  %v300_v54 = vunpack.c.0.s8 %v299_v49  ;;  %p582_p11 = scmp.ne.s32.totalorder %s863_s26, %s581_s24  ;;  %s585_s27 = sshll.u32 %s674_s12, 4  ;;  %s586_s27 = int_to_ptr.vmem [resolvable:$false] %s585_s27 }
  0x5f   : > { %v234_v10 = vrot.slane %v190_v8, %v233_v4  ;;  %v238_v11 = vrot.slane %v190_v8, %v237_v5  ;;  %v207_v12 = vrot.slane %v190_v8, %v206_v6  ;;  %v211_v13 = vrot.slane %v190_v8, %v210_v7  ;;  %s587_s29 = scalar_lea.vmem %s586_s27, 64  ;;  %p588_p9 = scmp.lt.s32.totalorder %s863_s26, %s586_s27 }
  0x60   : > { %v303_v59 = vsub.s32 %v300_v54, %v205_v3  ;;  %p583_p6 = pnand %p582_p11, %p791_p13  ;;  %p589_p12 = scmp.lt.s32.totalorder %s587_s29, %s581_s24 }
  0x61   : > { %v244_v16 = vrot.slane %v234_v10, %v233_v4  ;;  %v248_v17 = vrot.slane %v238_v11, %v233_v4  ;;  %v217_v18 = vrot.slane %v207_v12, %v206_v6  ;;  %v221_v19 = vrot.slane %v211_v13, %v206_v6 }
  0x62   : > { %p584_p8 = pneg %p583_p6  ;;  %p590_p0 = por %p589_p12, %p588_p9 }
  0x64   : > { %p591_p5 = pnand %p590_p0, %p584_p8 }
  0xcc   : > { %v225_v14 = vpop.permute.xlu1 %224  ;;  %v195_v15 = vpop.permute.xlu0 %194 }
  0xd0   : > { %v227_v20 = vpop.permute.xlu1 %226  ;;  %v197_v21 = vpop.permute.xlu0 %196 }
  0xd1   : > { %v229_v22 = vsel %vm228_vm0, %v225_v14, %v227_v20  ;;  %v230_v23 = vsel %vm228_vm0, %v227_v20, %v225_v14  ;;  %v201_v24 = vsel %vm200_vm1, %v195_v15, %v197_v21  ;;  %v202_v25 = vsel %vm200_vm1, %v197_v21, %v195_v15 }
  0xd2   : > { %v249_v26 = vmul.f32 %v244_v16, %v230_v23  ;;  %v250_v27 = vmul.f32 %v248_v17, %v229_v22  ;;  %v222_v28 = vmul.f32 %v217_v18, %v202_v25  ;;  %v223_v29 = vmul.f32 %v221_v19, %v201_v24 }
  0xd4   : > { %v255_v30 = vsub.f32 %v249_v26, %v189_v0  ;;  %v256_v31 = vsub.f32 %v250_v27, %v192_v1  ;;  %v251_v32 = vsub.f32 %v222_v28, %v189_v0  ;;  %v252_v33 = vsub.f32 %v223_v29, %v192_v1 }
  0xd6   : > { %v257_v34 = vand.u32 2147483647, %v255_v30  ;;  %v258_v35 = vand.u32 2147483647, %v256_v31  ;;  %v253_v36 = vand.u32 2147483647, %v251_v32 }
  0xd7   : > { %v254_v37 = vand.u32 2147483647, %v252_v33 }
  0xd8   : > { %v259_v38 = vadd.f32 %v257_v34, %v253_v36 }
  0xd9   : > { %v260_v39 = vadd.f32 %v258_v35, %v254_v37 }
  0xdb   : > { %v269_v40 = vcombine.low %v259_v38, %v260_v39  ;;  %v445_v41 = vcombine.low %v260_v39, %v260_v39 }
  0xdd   : > { %v281_v42 = vsel %vm280_vm2, %v269_v40, 0.0  ;;  %v288_v43 = vsel %vm280_vm2, %v445_v41, 0.0 }
  0xde   : > { %v282_v44 = vrot.slane %v281_v42, 4  ;;  %v289_v45 = vrot.slane %v288_v43, 4 }
  0xe0   : > { %v283_v46 = vadd.f32 %v282_v44, %v281_v42  ;;  %v290_v47 = vadd.f32 %v289_v45, %v288_v43 }
  0xe2   : > { %v284_v50 = vrot.slane %v283_v46, 2  ;;  %v291_v51 = vrot.slane %v290_v47, 2 }
  0xe4   : > { %v285_v52 = vadd.f32 %v284_v50, %v283_v46  ;;  %v292_v53 = vadd.f32 %v291_v51, %v290_v47 }
  0xe6   : > { %v286_v55 = vrot.slane %v285_v52, 1  ;;  %v293_v56 = vrot.slane %v292_v53, 1 }
  0xe8   : > { %v287_v57 = vadd.f32 %v286_v55, %v285_v52  ;;  %v294_v58 = vadd.f32 %v293_v56, %v292_v53 }
  0xea   : > { %v297_v60 = vcombine.low %v287_v57, %v294_v58 }
  0xec   : > { %v304_v61 = vrot.slane %v297_v60, %v303_v59 }
  0xee   : > { %v311_v62 = vrot.slane %v304_v61, %v303_v59 }
  0xf0   : > { %317 = vst.msk [vmem:[%s188_s4] sm:$0x3] %vm315_vm3, %v311_v62 }
  0xf1   : > { %594 = shalt.err (!%p591_p5)
}
  0xf2   : > { %s595_s30 = scalar_lea.hbm %s861_s16, 32  ;;  %s599_s5 = scalar_lea.hbm %s912_s2, 64 }
  0xf3   : > { %p596_p10 = scmp.ne.s32.totalorder %s861_s16, %s595_s30  ;;  %p600_p7 = scmp.lt.u32.totalorder %s861_s16, %s912_s2 }
  0xf4   : > { %p601_p3 = scmp.lt.u32.totalorder %s599_s5, %s595_s30  ;;  %p603_p11 = scmp.lt.u32.totalorder %s595_s30, %s861_s16 }
  0xf5   : > { %p597_p1 = pnand %p596_p10, %p791_p13 }
  0xf6   : > { %p602_p4 = por %p601_p3, %p600_p7 }
  0xf7   : > { %p598_p2 = pneg %p597_p1 }
  0xf8   : > { %p604_p6 = por %p603_p11, %p602_p4 }
  0xfa   : > { %p605_p8 = pnand %p604_p6, %p598_p2 }
  0xfc   : > { %608 = shalt.err (!%p605_p8)
}
  0xfd   : > { %452 = dma.vmem_to_hbm [thread:$0]  (%p791_p13), %s863_s26, 32, %s861_s16, %s319_s23  }
  0xfe PF: > { %s345_s3 = sand.u32 1, %s647_s9   ;;  %p931_p9 = scmp.ne.s32.totalorder %s920_s20, 0 }
  0xff   : > { %p932_p12 = scmp.ge.s32.totalorder %s667_s14, 2  ;;  %s346_s17 = scalar_lea.sflag [#allocation5], %s345_s3 }
 0x101   : > { %p463_p0 = pnand %p932_p12, %p931_p9 }
 0x103   : > { %642 = dma.done.wait (!%p463_p0), %s346_s17, 32  }
 0x104   : > { %644 = vsyncadd (!%p463_p0), %s346_s17, 4294967264  ;;  %s19_s14 = sadd.s32 1, %s667_s14   ;;  %s933_s9 = smov %s651_s10 }
 0x105   : > { %p16_p5 = scmp.ge.s32.totalorder %s19_s14, 4   ;;  %s934_s10 = smov %s655_s11 }
 0x106   : > { %s935_s11 = smov %s799_s28  ;;  %s936_s12 = smov %s663_s13 }
 0x107   : > { %s937_s13 = smov %s939_s25  ;;  %18 = sbr.rel (!%p16_p5) target bundleno = 7 (0x7), region = 86 }
 0x10e   :  { %351 = vsyncpa [#allocation4], 1 }
 0x10f   :  { %353 = vsyncpa [#allocation4 + $0x1], 1 }
 0x110   :  { %354 = vsyncpa [#allocation7], 1 }
 0x111   :  { %356 = vsyncpa [#allocation7 + $0x1], 1 }
 0x112   :  { %357 = vsyncpa [#allocation5], 1 }
 0x113   :  { %359 = vsyncpa [#allocation5 + $0x1], 1 }

</bundles_post_ra>
